<compile_context>
chip_gen: v5e
topology: v5e:2x2
jax: 0.10.0
libtpu: 0.0.40
codegen_flags: <defaults>
</compile_context>

<pallas_src>
import functools

import jax
import jax.numpy as jnp
from jax.experimental import pallas as pl
from jax.experimental.pallas import tpu as pltpu


def _row_copy(table_hbm, buf, row, slot, sem):
    """DMA descriptor copying one (1, H) row:  table_hbm[row] -> buf[slot]."""
    return pltpu.make_async_copy(table_hbm.at[pl.ds(row, 1)],
                                 buf.at[pl.ds(slot, 1)],
                                 sem)


def _embeddings_kernel(input_ids_smem, position_ids_smem,       # scalar prefetch (SMEM)
                       token_type_ref,                           # (TS, 1) int32, VMEM
                       word_hbm, pos_hbm,                        # (V,H)/(P,H) f32, HBM
                       type_emb_ref, gamma_ref, beta_ref,        # small VMEM blocks
                       out_ref,                                   # (TS, H) f32, VMEM
                       wbuf, pbuf, sems,                          # scratch
                       *, eps, ts, num_types):
    base = pl.program_id(0) * ts
    H = out_ref.shape[1]

    # 1) Issue per-row gather DMAs for word and position embeddings (tables in HBM).
    #    NOTE: out-of-range ids are not validated (same as original one-hot kernel).
    @pl.loop(0, ts)
    def _issue(t):
        wid = input_ids_smem[base + t]
        pid = position_ids_smem[base + t]
        _row_copy(word_hbm, wbuf, wid, t, sems.at[0]).start()
        _row_copy(pos_hbm, pbuf, pid, t, sems.at[1]).start()

    # 2) Token-type embedding via VPU select/accumulate while the DMAs are in flight.
    tt = token_type_ref[...]                                    # (TS, 1) int32
    te = type_emb_ref[...]                                      # (T, H)  f32
    type_sum = jnp.zeros((ts, H), jnp.float32)
    for i in range(num_types):                                  # static, T is tiny (e.g. 2)
        type_sum = type_sum + (tt == i).astype(jnp.float32) * te[i:i + 1]

    # 3) Wait for all gathers (one wait per issued copy; all copies are equal-sized).
    @pl.loop(0, ts)
    def _wait(t):
        _row_copy(word_hbm, wbuf, 0, t, sems.at[0]).wait()
        _row_copy(pos_hbm, pbuf, 0, t, sems.at[1]).wait()

    # 4) Sum + LayerNorm over the hidden dimension.
    x = wbuf[...] + pbuf[...] + type_sum                         # (TS, H) f32
    mean = jnp.mean(x, axis=-1, keepdims=True)
    var = jnp.mean((x - mean) ** 2, axis=-1, keepdims=True)
    y = (x - mean) * jax.lax.rsqrt(var + eps)
    y = y * gamma_ref[...] + beta_ref[...]                       # (1, H) broadcasts
    # TODO(synk): training-mode dropout not implemented (eval mode -> identity).
    out_ref[...] = y.astype(out_ref.dtype)


def embeddings_forward(input_ids, token_type_ids, position_ids,
                       word_emb, type_emb, pos_emb, gamma, beta,
                       *, eps=1e-12, token_tile=128):
    B, S = input_ids.shape
    V, H = word_emb.shape
    T = type_emb.shape[0]

    N = B * S
    TS = token_tile
    n_tiles = (N + TS - 1) // TS
    Np = n_tiles * TS

    # Flatten tokens and pad to a multiple of the token tile (padded rows use id 0,
    # are computed independently, and are sliced off afterwards).
    ids_flat = jnp.pad(input_ids.reshape(-1).astype(jnp.int32), (0, Np - N))
    pid_flat = jnp.pad(position_ids.reshape(-1).astype(jnp.int32), (0, Np - N))
    tt_2d = jnp.pad(token_type_ids.reshape(-1).astype(jnp.int32),
                    (0, Np - N)).reshape(Np, 1)

    gamma2 = gamma.reshape(1, H).astype(jnp.float32)
    beta2 = beta.reshape(1, H).astype(jnp.float32)

    kernel = functools.partial(_embeddings_kernel, eps=eps, ts=TS, num_types=T)

    grid_spec = pltpu.PrefetchScalarGridSpec(
        num_scalar_prefetch=2,                                  # input_ids, position_ids -> SMEM
        grid=(n_tiles,),
        in_specs=[
            pl.BlockSpec((TS, 1), lambda i, ids, pids: (i, 0)),  # token_type_ids (VMEM)
            pl.BlockSpec(memory_space=pl.ANY),                   # word_emb stays in HBM
            pl.BlockSpec(memory_space=pl.ANY),                   # pos_emb stays in HBM
            pl.BlockSpec((T, H), lambda i, ids, pids: (0, 0)),   # token-type table (tiny)
            pl.BlockSpec((1, H), lambda i, ids, pids: (0, 0)),   # LayerNorm gamma
            pl.BlockSpec((1, H), lambda i, ids, pids: (0, 0)),   # LayerNorm beta
        ],
        out_specs=pl.BlockSpec((TS, H), lambda i, ids, pids: (i, 0)),
        scratch_shapes=[
            pltpu.VMEM((TS, H), jnp.float32),                    # gathered word rows
            pltpu.VMEM((TS, H), jnp.float32),                    # gathered position rows
            pltpu.SemaphoreType.DMA((2,)),                       # word / pos DMA semaphores
        ],
    )

    out_flat = pl.pallas_call(
        kernel,
        out_shape=jax.ShapeDtypeStruct((Np, H), jnp.float32),
        grid_spec=grid_spec,
        compiler_params=pltpu.CompilerParams(
            dimension_semantics=("parallel",)),
    )(ids_flat, pid_flat, tt_2d, word_emb, pos_emb, type_emb, gamma2, beta2)

    return out_flat[:N].reshape(B, S, H)


def reference_forward(input_ids, token_type_ids, position_ids,
                      word_emb, type_emb, pos_emb, gamma, beta, eps=1e-12):
    x = word_emb[input_ids] + type_emb[token_type_ids] + pos_emb[position_ids]
    mean = jnp.mean(x, axis=-1, keepdims=True)
    var = jnp.mean((x - mean) ** 2, axis=-1, keepdims=True)
    return (x - mean) * jax.lax.rsqrt(var + eps) * gamma[0] + beta[0]


if __name__ == "__main__":
    # Small synthetic config (mirrors Embeddings.__init__ shapes).
    vocab_size = 32
    hidden_size = 32
    type_vocab_size = 2
    max_position_embeddings = 16
    pad_token_id = 0
    layer_norm_eps = 1e-12

    B, S = 2, 8

    key = jax.random.PRNGKey(0)
    k_word, k_type, k_pos, k_ids = jax.random.split(key, 4)

    # Deterministic parameter init (nn.Embedding ~ N(0,1); LayerNorm: weight=1, bias=0).
    word_emb = jax.random.normal(k_word, (vocab_size, hidden_size), jnp.float32)
    word_emb = word_emb.at[pad_token_id].set(0.0)        # padding_idx row is zero
    type_emb = jax.random.normal(k_type, (type_vocab_size, hidden_size), jnp.float32)
    pos_emb = jax.random.normal(k_pos, (max_position_embeddings, hidden_size), jnp.float32)
    gamma = jnp.ones((1, hidden_size), jnp.float32)
    beta = jnp.zeros((1, hidden_size), jnp.float32)

    # Inputs: input_ids; default token_type_ids (zeros) and position_ids (arange).
    input_ids = jax.random.randint(k_ids, (B, S), 0, vocab_size, jnp.int32)
    token_type_ids = jnp.zeros((B, S), jnp.int32)
    position_ids = jnp.broadcast_to(jnp.arange(S, dtype=jnp.int32)[None, :], (B, S))

    out = embeddings_forward(input_ids, token_type_ids, position_ids,
                             word_emb, type_emb, pos_emb, gamma, beta,
                             eps=layer_norm_eps)
    out = jax.block_until_ready(out)

    ref = reference_forward(input_ids, token_type_ids, position_ids,
                            word_emb, type_emb, pos_emb, gamma, beta,
                            eps=layer_norm_eps)
    assert out.shape == (B, S, hidden_size)
    assert jnp.allclose(out, ref, atol=1e-5, rtol=1e-5)

    print("KERNEL_OK")
</pallas_src>

<mosaic_0001>
module attributes {stable_mosaic.version = 11 : i64} {
  func.func @_embeddings_kernel(%arg0: i32, %arg1: memref<128xi32, #tpu.memory_space<smem>>, %arg2: memref<128xi32, #tpu.memory_space<smem>>, %arg3: memref<128x1xi32, #tpu.memory_space<vmem>>, %arg4: memref<32x32xf32, #tpu.memory_space<any>>, %arg5: memref<16x32xf32, #tpu.memory_space<any>>, %arg6: memref<2x32xf32, #tpu.memory_space<vmem>>, %arg7: memref<1x32xf32, #tpu.memory_space<vmem>>, %arg8: memref<1x32xf32, #tpu.memory_space<vmem>>, %arg9: memref<128x32xf32, #tpu.memory_space<vmem>>, %arg10: memref<128x32xf32, #tpu.memory_space<vmem>>, %arg11: memref<128x32xf32, #tpu.memory_space<vmem>>, %arg12: memref<2x!tpu.dma_semaphore, #tpu.memory_space<semaphore_mem>>) attributes {dimension_semantics = [#tpu.dimension_semantics<parallel>], iteration_bounds = array<i64: 1>, scalar_prefetch = 2 : i64, scratch_operands = 3 : i64, tpu.core_type = #tpu.core_type<tc>, window_params = [{transform_indices = @transform_0, window_bounds = array<i64: 128, 1>}, {}, {}, {pipeline_mode = #tpu.pipeline_mode<synchronous>, transform_indices = @transform_3, window_bounds = array<i64: 2, 32>}, {pipeline_mode = #tpu.pipeline_mode<synchronous>, transform_indices = @transform_4, window_bounds = array<i64: 1, 32>}, {pipeline_mode = #tpu.pipeline_mode<synchronous>, transform_indices = @transform_5, window_bounds = array<i64: 1, 32>}, {transform_indices = @transform_6, window_bounds = array<i64: 128, 32>}]} {
    %c128_i32 = arith.constant 128 : i32
    %0 = arith.muli %arg0, %c128_i32 : i32
    %c0_i32 = arith.constant 0 : i32
    %c128_i32_0 = arith.constant 128 : i32
    %1 = arith.addi %c0_i32, %c128_i32_0 : i32
    %c1_i32 = arith.constant 1 : i32
    scf.for %arg13 = %c0_i32 to %1 step %c1_i32  : i32 {
      %c1_i32_26 = arith.constant 1 : i32
      %53 = arith.muli %arg13, %c1_i32_26 : i32
      %c0_i32_27 = arith.constant 0 : i32
      %54 = arith.addi %c0_i32_27, %53 : i32
      %55 = arith.addi %0, %54 : i32
      %56 = arith.index_cast %55 : i32 to index
      %57 = memref.load %arg1[%56] : memref<128xi32, #tpu.memory_space<smem>>
      %58 = arith.addi %0, %54 : i32
      %59 = arith.index_cast %58 : i32 to index
      %60 = memref.load %arg2[%59] : memref<128xi32, #tpu.memory_space<smem>>
      %c0_i32_28 = arith.constant 0 : i32
      %c0_i32_29 = arith.constant 0 : i32
      %61 = tpu.memref_slice %arg4[%57, %c0_i32_29] : memref<32x32xf32, #tpu.memory_space<any>> -> memref<1x32xf32, #tpu.memory_space<any>>
      %c0_i32_30 = arith.constant 0 : i32
      %62 = tpu.memref_slice %arg10[%54, %c0_i32_30] : memref<128x32xf32, #tpu.memory_space<vmem>> -> memref<1x32xf32, #tpu.memory_space<vmem>>
      %63 = tpu.memref_slice %arg12[%c0_i32_28] : memref<2x!tpu.dma_semaphore, #tpu.memory_space<semaphore_mem>> -> memref<1x!tpu.dma_semaphore, #tpu.memory_space<semaphore_mem>>
      %64 = tpu.memref_squeeze %63 : memref<1x!tpu.dma_semaphore, #tpu.memory_space<semaphore_mem>> -> memref<!tpu.dma_semaphore, #tpu.memory_space<semaphore_mem>>
      tpu.enqueue_dma source(%61 : memref<1x32xf32, #tpu.memory_space<any>>) target(%62 : memref<1x32xf32, #tpu.memory_space<vmem>>) target_semaphore(%64 : memref<!tpu.dma_semaphore, #tpu.memory_space<semaphore_mem>>)
      %c1_i32_31 = arith.constant 1 : i32
      %c0_i32_32 = arith.constant 0 : i32
      %65 = tpu.memref_slice %arg5[%60, %c0_i32_32] : memref<16x32xf32, #tpu.memory_space<any>> -> memref<1x32xf32, #tpu.memory_space<any>>
      %c0_i32_33 = arith.constant 0 : i32
      %66 = tpu.memref_slice %arg11[%54, %c0_i32_33] : memref<128x32xf32, #tpu.memory_space<vmem>> -> memref<1x32xf32, #tpu.memory_space<vmem>>
      %67 = tpu.memref_slice %arg12[%c1_i32_31] : memref<2x!tpu.dma_semaphore, #tpu.memory_space<semaphore_mem>> -> memref<1x!tpu.dma_semaphore, #tpu.memory_space<semaphore_mem>>
      %68 = tpu.memref_squeeze %67 : memref<1x!tpu.dma_semaphore, #tpu.memory_space<semaphore_mem>> -> memref<!tpu.dma_semaphore, #tpu.memory_space<semaphore_mem>>
      tpu.enqueue_dma source(%65 : memref<1x32xf32, #tpu.memory_space<any>>) target(%66 : memref<1x32xf32, #tpu.memory_space<vmem>>) target_semaphore(%68 : memref<!tpu.dma_semaphore, #tpu.memory_space<semaphore_mem>>)
    }
    %c128_i32_1 = arith.constant 128 : i32
    %c0 = arith.constant 0 : index
    %c0_2 = arith.constant 0 : index
    %2 = vector.load %arg3[%c0, %c0_2] : memref<128x1xi32, #tpu.memory_space<vmem>>, vector<128x1xi32>
    %c0_3 = arith.constant 0 : index
    %c0_4 = arith.constant 0 : index
    %3 = vector.load %arg6[%c0_3, %c0_4] : memref<2x32xf32, #tpu.memory_space<vmem>>, vector<2x32xf32>
    %cst = arith.constant 0.000000e+00 : f32
    %4 = vector.broadcast %cst : f32 to vector<128x32xf32>
    %c0_i32_5 = arith.constant 0 : i32
    %5 = vector.broadcast %c0_i32_5 : i32 to vector<128x1xi32>
    %6 = arith.cmpi eq, %2, %5 : vector<128x1xi32>
    %7 = arith.extui %6 : vector<128x1xi1> to vector<128x1xi32>
    %8 = arith.sitofp %7 : vector<128x1xi32> to vector<128x1xf32>
    %9 = vector.extract_strided_slice %3 {offsets = [0, 0], sizes = [1, 32], strides = [1, 1]} : vector<2x32xf32> to vector<1x32xf32>
    %10 = vector.broadcast %8 : vector<128x1xf32> to vector<128x32xf32>
    %11 = vector.broadcast %9 : vector<1x32xf32> to vector<128x32xf32>
    %12 = arith.mulf %10, %11 : vector<128x32xf32>
    %13 = arith.addf %4, %12 : vector<128x32xf32>
    %c1_i32_6 = arith.constant 1 : i32
    %14 = vector.broadcast %c1_i32_6 : i32 to vector<128x1xi32>
    %15 = arith.cmpi eq, %2, %14 : vector<128x1xi32>
    %16 = arith.extui %15 : vector<128x1xi1> to vector<128x1xi32>
    %17 = arith.sitofp %16 : vector<128x1xi32> to vector<128x1xf32>
    %18 = vector.extract_strided_slice %3 {offsets = [1, 0], sizes = [1, 32], strides = [1, 1]} : vector<2x32xf32> to vector<1x32xf32>
    %19 = vector.broadcast %17 : vector<128x1xf32> to vector<128x32xf32>
    %20 = vector.broadcast %18 : vector<1x32xf32> to vector<128x32xf32>
    %21 = arith.mulf %19, %20 : vector<128x32xf32>
    %22 = arith.addf %13, %21 : vector<128x32xf32>
    %c0_i32_7 = arith.constant 0 : i32
    %c128_i32_8 = arith.constant 128 : i32
    %23 = arith.addi %c0_i32_7, %c128_i32_8 : i32
    %c1_i32_9 = arith.constant 1 : i32
    scf.for %arg13 = %c0_i32_7 to %23 step %c1_i32_9  : i32 {
      %c1_i32_26 = arith.constant 1 : i32
      %53 = arith.muli %arg13, %c1_i32_26 : i32
      %c0_i32_27 = arith.constant 0 : i32
      %54 = arith.addi %c0_i32_27, %53 : i32
      %c0_i32_28 = arith.constant 0 : i32
      %c0_i32_29 = arith.constant 0 : i32
      %c0_i32_30 = arith.constant 0 : i32
      %55 = tpu.memref_slice %arg4[%c0_i32_29, %c0_i32_30] : memref<32x32xf32, #tpu.memory_space<any>> -> memref<1x32xf32, #tpu.memory_space<any>>
      %c0_i32_31 = arith.constant 0 : i32
      %56 = tpu.memref_slice %arg10[%54, %c0_i32_31] : memref<128x32xf32, #tpu.memory_space<vmem>> -> memref<1x32xf32, #tpu.memory_space<vmem>>
      %57 = tpu.memref_slice %arg12[%c0_i32_28] : memref<2x!tpu.dma_semaphore, #tpu.memory_space<semaphore_mem>> -> memref<1x!tpu.dma_semaphore, #tpu.memory_space<semaphore_mem>>
      %58 = tpu.memref_squeeze %57 : memref<1x!tpu.dma_semaphore, #tpu.memory_space<semaphore_mem>> -> memref<!tpu.dma_semaphore, #tpu.memory_space<semaphore_mem>>
      tpu.wait_dma2 semaphore(%58 : memref<!tpu.dma_semaphore, #tpu.memory_space<semaphore_mem>>) src(%55 : memref<1x32xf32, #tpu.memory_space<any>>) dst(%56 : memref<1x32xf32, #tpu.memory_space<vmem>>)
      %c1_i32_32 = arith.constant 1 : i32
      %c0_i32_33 = arith.constant 0 : i32
      %c0_i32_34 = arith.constant 0 : i32
      %59 = tpu.memref_slice %arg5[%c0_i32_33, %c0_i32_34] : memref<16x32xf32, #tpu.memory_space<any>> -> memref<1x32xf32, #tpu.memory_space<any>>
      %c0_i32_35 = arith.constant 0 : i32
      %60 = tpu.memref_slice %arg11[%54, %c0_i32_35] : memref<128x32xf32, #tpu.memory_space<vmem>> -> memref<1x32xf32, #tpu.memory_space<vmem>>
      %61 = tpu.memref_slice %arg12[%c1_i32_32] : memref<2x!tpu.dma_semaphore, #tpu.memory_space<semaphore_mem>> -> memref<1x!tpu.dma_semaphore, #tpu.memory_space<semaphore_mem>>
      %62 = tpu.memref_squeeze %61 : memref<1x!tpu.dma_semaphore, #tpu.memory_space<semaphore_mem>> -> memref<!tpu.dma_semaphore, #tpu.memory_space<semaphore_mem>>
      tpu.wait_dma2 semaphore(%62 : memref<!tpu.dma_semaphore, #tpu.memory_space<semaphore_mem>>) src(%59 : memref<1x32xf32, #tpu.memory_space<any>>) dst(%60 : memref<1x32xf32, #tpu.memory_space<vmem>>)
    }
    %c128_i32_10 = arith.constant 128 : i32
    %c0_11 = arith.constant 0 : index
    %c0_12 = arith.constant 0 : index
    %24 = vector.load %arg10[%c0_11, %c0_12] : memref<128x32xf32, #tpu.memory_space<vmem>>, vector<128x32xf32>
    %c0_13 = arith.constant 0 : index
    %c0_14 = arith.constant 0 : index
    %25 = vector.load %arg11[%c0_13, %c0_14] : memref<128x32xf32, #tpu.memory_space<vmem>>, vector<128x32xf32>
    %26 = arith.addf %24, %25 : vector<128x32xf32>
    %27 = arith.addf %26, %22 : vector<128x32xf32>
    %cst_15 = arith.constant dense<0.000000e+00> : vector<128xf32>
    %28 = vector.multi_reduction <add>, %27, %cst_15 [1] : vector<128x32xf32> to vector<128xf32>
    %29 = vector.shape_cast %28 : vector<128xf32> to vector<128x1xf32>
    %cst_16 = arith.constant 3.200000e+01 : f32
    %30 = vector.broadcast %cst_16 : f32 to vector<128x1xf32>
    %31 = arith.divf %29, %30 : vector<128x1xf32>
    %32 = vector.broadcast %31 : vector<128x1xf32> to vector<128x32xf32>
    %33 = arith.subf %27, %32 : vector<128x32xf32>
    %34 = arith.mulf %33, %33 : vector<128x32xf32>
    %cst_17 = arith.constant dense<0.000000e+00> : vector<128xf32>
    %35 = vector.multi_reduction <add>, %34, %cst_17 [1] : vector<128x32xf32> to vector<128xf32>
    %36 = vector.shape_cast %35 : vector<128xf32> to vector<128x1xf32>
    %cst_18 = arith.constant 3.200000e+01 : f32
    %37 = vector.broadcast %cst_18 : f32 to vector<128x1xf32>
    %38 = arith.divf %36, %37 : vector<128x1xf32>
    %39 = vector.broadcast %31 : vector<128x1xf32> to vector<128x32xf32>
    %40 = arith.subf %27, %39 : vector<128x32xf32>
    %cst_19 = arith.constant 9.99999996E-13 : f32
    %41 = vector.broadcast %cst_19 : f32 to vector<128x1xf32>
    %42 = arith.addf %38, %41 : vector<128x1xf32>
    %43 = math.rsqrt %42 : vector<128x1xf32>
    %44 = vector.broadcast %43 : vector<128x1xf32> to vector<128x32xf32>
    %45 = arith.mulf %40, %44 : vector<128x32xf32>
    %c0_20 = arith.constant 0 : index
    %c0_21 = arith.constant 0 : index
    %46 = vector.load %arg7[%c0_20, %c0_21] : memref<1x32xf32, #tpu.memory_space<vmem>>, vector<1x32xf32>
    %47 = vector.broadcast %46 : vector<1x32xf32> to vector<128x32xf32>
    %48 = arith.mulf %45, %47 : vector<128x32xf32>
    %c0_22 = arith.constant 0 : index
    %c0_23 = arith.constant 0 : index
    %49 = vector.load %arg8[%c0_22, %c0_23] : memref<1x32xf32, #tpu.memory_space<vmem>>, vector<1x32xf32>
    %50 = vector.broadcast %49 : vector<1x32xf32> to vector<128x32xf32>
    %51 = arith.addf %48, %50 : vector<128x32xf32>
    %c0_24 = arith.constant 0 : index
    %c0_25 = arith.constant 0 : index
    %52 = vector.load %arg9[%c0_24, %c0_25] : memref<128x32xf32, #tpu.memory_space<vmem>>, vector<128x32xf32>
    tpu.vector_store %arg9[%c0_24, %c0_25], %51 {strides = array<i32>} : memref<128x32xf32, #tpu.memory_space<vmem>>, vector<128x32xf32>,
    return
  }
  func.func @transform_0(%arg0: i32, %arg1: memref<128xi32, #tpu.memory_space<smem>>, %arg2: memref<128xi32, #tpu.memory_space<smem>>) -> (i32, i32) {
    %c0_i32 = arith.constant 0 : i32
    %c0_i32_0 = arith.constant 0 : i32
    return %arg0, %c0_i32 : i32, i32
  }
  func.func @transform_3(%arg0: i32, %arg1: memref<128xi32, #tpu.memory_space<smem>>, %arg2: memref<128xi32, #tpu.memory_space<smem>>) -> (i32, i32) {
    %c0_i32 = arith.constant 0 : i32
    %c0_i32_0 = arith.constant 0 : i32
    %c0_i32_1 = arith.constant 0 : i32
    return %c0_i32, %c0_i32_0 : i32, i32
  }
  func.func @transform_4(%arg0: i32, %arg1: memref<128xi32, #tpu.memory_space<smem>>, %arg2: memref<128xi32, #tpu.memory_space<smem>>) -> (i32, i32) {
    %c0_i32 = arith.constant 0 : i32
    %c0_i32_0 = arith.constant 0 : i32
    %c0_i32_1 = arith.constant 0 : i32
    return %c0_i32, %c0_i32_0 : i32, i32
  }
  func.func @transform_5(%arg0: i32, %arg1: memref<128xi32, #tpu.memory_space<smem>>, %arg2: memref<128xi32, #tpu.memory_space<smem>>) -> (i32, i32) {
    %c0_i32 = arith.constant 0 : i32
    %c0_i32_0 = arith.constant 0 : i32
    %c0_i32_1 = arith.constant 0 : i32
    return %c0_i32, %c0_i32_0 : i32, i32
  }
  func.func @transform_6(%arg0: i32, %arg1: memref<128xi32, #tpu.memory_space<smem>>, %arg2: memref<128xi32, #tpu.memory_space<smem>>) -> (i32, i32) {
    %c0_i32 = arith.constant 0 : i32
    %c0_i32_0 = arith.constant 0 : i32
    return %arg0, %c0_i32 : i32, i32
  }
}

</mosaic_0001>

<bundles_post_ra>
// kernel: tpu_custom_call.1
= control target key start
LH: loop header
LB: loop body
LE: loop exit
PB: predicated region body
PF: predicated region fallthrough
CT: control target
= control target key end

     0   :  { %s1207_s11 = smov [#allocation6]   ;;  %s1208_s12 = smov [#allocation7]   ;;  %s1942_s0 = inlined_call_operand.vmem [shape: s32[128], index: 0, kind: input, shape index: {}]   ;;  %s1943_s2 = inlined_call_operand.vmem [shape: s32[128,1], index: 2, kind: input, shape index: {}]   ;;  %s1944_s3 = inlined_call_operand.vmem [shape: f32[32,32], index: 3, kind: input, shape index: {}]   ;;  %s1945_s4 = inlined_call_operand.vmem [shape: f32[16,32], index: 4, kind: input, shape index: {}]   ;;  %s1946_s5 = inlined_call_operand.vmem [shape: f32[2,32], index: 5, kind: input, shape index: {}]   ;;  %s1947_s6 = inlined_call_operand.vmem [shape: f32[1,32], index: 6, kind: input, shape index: {}]   ;;  %s1948_s7 = inlined_call_operand.vmem [shape: f32[1,32], index: 7, kind: input, shape index: {}]   ;;  %s1949_s8 = inlined_call_operand.vmem [shape: f32[128,32], index: 8, kind: output, shape index: {}]   ;;  %s1950_s1 = inlined_call_operand.vmem [shape: s32[128], index: 1, kind: input, shape index: {}]  }
   0x1   :  { %s14_s29 = sshll.u32 %s1942_s0, 4  ;;  %s19_s10 = sshll.u32 %s1950_s1, 4  ;;  %s15_s29 = int_to_ptr.vmem [resolvable:$true] %s14_s29  ;;  %s20_s10 = int_to_ptr.vmem [resolvable:$true] %s19_s10 }
   0x2   :  { %17 = dma.vmem_to_smem %s15_s29, 16, %s1207_s11, [#allocation5] }
   0x3   :  { %22 = dma.vmem_to_smem %s20_s10, 16, %s1208_s12, [#allocation5] }
   0x4   :  { %1193 = dma.done.wait [#allocation5], 32 }
   0x5   :  { %1194 = vsyncadd [#allocation5], 4294967264 }
   0x6   :  { %25 = sfence }
   0x7   :  { %s1199_s13 = smov 0  }
   0x8 LB: > { %s42_s14 = sld [smem:[#allocation6 + %s1201_s13]]  ;;  %s45_s1 = scalar_lea.vmem [#allocation2], %s1201_s13  ;;  %s1201_s13 = sphi %s1199_s13, %s40_s13  }
   0x9   : > { %s43_s15 = sld [smem:[#allocation7 + %s1201_s13]] }
   0xe   : > { %s44_s17 = scalar_lea.vmem %s1944_s3, %s42_s14 }
   0xf   : > { %v60_v0 = vld [vmem:[%s44_s17] sm:$0x1] }
  0x10   : > { %61 = vst [vmem:[%s45_s1] sm:$0x1] %v60_v0 }
  0x11   : > { %79 = vsyncadd [#allocation4], 16  ;;  %s80_s20 = scalar_lea.vmem %s1945_s4, %s43_s15  ;;  %s81_s21 = scalar_lea.vmem [#allocation3], %s1201_s13 }
  0x12   : > { %v97_v1 = vld [vmem:[%s80_s20] sm:$0x1] }
  0x13   : > { %98 = vst [vmem:[%s81_s21] sm:$0x1] %v97_v1 }
  0x14   : > { %116 = vsyncadd [#allocation4 + $0x1], 16  ;;  %s40_s13 = sadd.s32 1, %s1201_s13  }
  0x15   : > { %p37_p0 = scmp.ge.s32.totalorder %s40_s13, 128  }
  0x16   :  { %v1272_v2 = vld [vmem:[%s1943_s2 + $0x40] sm:$0xff] (%p37_p0)  ;;  %v1277_v3 = vld [vmem:[%s1943_s2 + $0x48] sm:$0xff] (%p37_p0)  ;;  %v1209_v5 = vmov (%p37_p0), 0   ;;  %v1210_v8 = vmov (%p37_p0), 0.0   ;;  %v1306_v15 = vld [vmem:[%s1943_s2 + $0x50] sm:$0xff] (%p37_p0) }
  0x17   :  { %39 = sbr.rel (!%p37_p0) target bundleno = 8 (0x8), region = 125  ;;  %v1282_v4 = vld [vmem:[%s1943_s2 + $0x20] sm:$0xff] (%p37_p0)  ;;  %1064 = vset.pattern.permute.xlu2 (%p37_p0), %v1209_v5  ;;  %1053 = vset.pattern.permute.xlu1 (%p37_p0), %v1209_v5  ;;  %vm142_vm0 = vcmp.eq.s32.totalorder (%p37_p0), %v1272_v2, 0  ;;  %vm143_vm1 = vcmp.eq.s32.totalorder (%p37_p0), %v1277_v3, 0  ;;  %v1289_v6 = vld [vmem:[%s1943_s2 + $0x28] sm:$0xff] (%p37_p0)  ;;  %v1311_v16 = vld [vmem:[%s1943_s2 + $0x58] sm:$0xff] (%p37_p0) }
  0x18   :  { %v117_v7 = vld [vmem:[%s1943_s2] sm:$0xff] (%p37_p0)  ;;  %1042 = vset.pattern.permute.xlu0 (%p37_p0), %v1209_v5  ;;  %v995_v9 = vsel (%p37_p0), %vm142_vm0, 1.0, %v1210_v8  ;;  %v996_v10 = vsel (%p37_p0), %vm143_vm1, 1.0, %v1210_v8  ;;  %vm138_vm2 = vcmp.eq.s32.totalorder (%p37_p0), %v1282_v4, 0  ;;  %vm139_vm3 = vcmp.eq.s32.totalorder (%p37_p0), %v1289_v6, 0  ;;  %v118_v11 = vld [vmem:[%s1943_s2 + $0x8] sm:$0xff] (%p37_p0) }
  0x19   :  { %v1065_v12 = vpack.i.bf16 (%p37_p0), %v996_v10, %v995_v9  ;;  %v991_v13 = vsel (%p37_p0), %vm138_vm2, 1.0, %v1210_v8  ;;  %v992_v14 = vsel (%p37_p0), %vm139_vm3, 1.0, %v1210_v8  ;;  %v123_v17 = vld [vmem:[%s1943_s2 + $0x30] sm:$0xff] (%p37_p0)  ;;  %vm134_vm4 = vcmp.eq.s32.totalorder (%p37_p0), %v117_v7, 0  ;;  %v124_v19 = vld [vmem:[%s1943_s2 + $0x38] sm:$0xff] (%p37_p0)  ;;  %v129_v35 = vld [vmem:[%s1943_s2 + $0x60] sm:$0xff] (%p37_p0) }
  0x1a   :  { %v1054_v18 = vpack.i.bf16 (%p37_p0), %v992_v14, %v991_v13  ;;  %vm135_vm5 = vcmp.eq.s32.totalorder (%p37_p0), %v118_v11, 0  ;;  %v987_v20 = vsel (%p37_p0), %vm134_vm4, 1.0, %v1210_v8  ;;  %v119_v22 = vld [vmem:[%s1943_s2 + $0x10] sm:$0xff] (%p37_p0)  ;;  %v120_v23 = vld [vmem:[%s1943_s2 + $0x18] sm:$0xff] (%p37_p0)  ;;  %vm144_vm6 = vcmp.eq.s32.totalorder (%p37_p0), %v1306_v15, 0  ;;  %v130_v36 = vld [vmem:[%s1943_s2 + $0x68] sm:$0xff] (%p37_p0) }
  0x1b   :  { %1066 = vperm.xlu2 (%p37_p0), %1064, %v1065_v12   ;;  %v988_v21 = vsel (%p37_p0), %vm135_vm5, 1.0, %v1210_v8  ;;  %vm145_vm7 = vcmp.eq.s32.totalorder (%p37_p0), %v1311_v16, 0  ;;  %vm140_vm8 = vcmp.eq.s32.totalorder (%p37_p0), %v123_v17, 0  ;;  %v997_v25 = vsel (%p37_p0), %vm144_vm6, 1.0, %v1210_v8  ;;  %v1338_v32 = vld [vmem:[%s1943_s2 + $0x70] sm:$0xff] (%p37_p0)  ;;  %v1343_v33 = vld [vmem:[%s1943_s2 + $0x78] sm:$0xff] (%p37_p0) }
  0x1c   :  { %1055 = vperm.xlu1 %1053, %v1054_v18   ;;  %v1043_v24 = vpack.i.bf16 %v988_v21, %v987_v20  ;;  %v998_v26 = vsel %vm145_vm7, 1.0, %v1210_v8  ;;  %vm141_vm9 = vcmp.eq.s32.totalorder %v124_v19, 0  ;;  %v993_v27 = vsel %vm140_vm8, 1.0, %v1210_v8 }
  0x1d   :  { %v994_v28 = vsel %vm141_vm9, 1.0, %v1210_v8  ;;  %vm136_vm10 = vcmp.eq.s32.totalorder %v119_v22, 0  ;;  %vm137_vm11 = vcmp.eq.s32.totalorder %v120_v23, 0  ;;  %v1070_v29 = vpack.i.bf16 %v998_v26, %v997_v25 }
  0x1e   :  { %1044 = vperm.xlu0 %1042, %v1043_v24   ;;  %v989_v30 = vsel %vm136_vm10, 1.0, %v1210_v8  ;;  %v990_v31 = vsel %vm137_vm11, 1.0, %v1210_v8  ;;  %v1059_v34 = vpack.i.bf16 %v994_v28, %v993_v27  ;;  %vm295_vm12 = vcmp.eq.s32.totalorder %v117_v7, 1  ;;  %v133_v7 = vld [vmem:[%s1946_s5] sm:$0x3]  ;;  %s1203_s5 = smov 0  }
  0x1f   :  { %vm296_vm13 = vcmp.eq.s32.totalorder %v118_v11, 1  ;;  %v1048_v37 = vpack.i.bf16 %v990_v31, %v989_v30  ;;  %vm148_vm14 = vcmp.eq.s32.totalorder %v1338_v32, 0  ;;  %vm149_vm15 = vcmp.eq.s32.totalorder %v1343_v33, 0 }
  0x20   :  { %v1003_v38 = vsel %vm295_vm12, 1.0, %v1210_v8  ;;  %v1004_v39 = vsel %vm296_vm13, 1.0, %v1210_v8  ;;  %vm146_vm0 = vcmp.eq.s32.totalorder %v129_v35, 0  ;;  %vm147_vm1 = vcmp.eq.s32.totalorder %v130_v36, 0 }
  0x21   :  { %v1001_v40 = vsel %vm148_vm14, 1.0, %v1210_v8  ;;  %v1002_v41 = vsel %vm149_vm15, 1.0, %v1210_v8  ;;  %v1085_v42 = vpack.i.bf16 %v1004_v39, %v1003_v38  ;;  %v999_v43 = vsel %vm146_vm0, 1.0, %v1210_v8 }
  0x22   :  { %v1000_v44 = vsel %vm147_vm1, 1.0, %v1210_v8  ;;  %v1080_v45 = vpack.i.bf16 %v1002_v41, %v1001_v40  ;;  %vm301_vm2 = vcmp.eq.s32.totalorder %v123_v17, 1  ;;  %vm302_vm3 = vcmp.eq.s32.totalorder %v124_v19, 1 }
  0x23   :  { %1071 = vperm.xlu2 %1064, %v1070_v29   ;;  %vm299_vm4 = vcmp.eq.s32.totalorder %v1282_v4, 1  ;;  %vm300_vm5 = vcmp.eq.s32.totalorder %v1289_v6, 1  ;;  %v1075_v46 = vpack.i.bf16 %v1000_v44, %v999_v43  ;;  %v1009_v47 = vsel %vm301_vm2, 1.0, %v1210_v8 }
  0x24   :  { %1060 = vperm.xlu1 %1053, %v1059_v34   ;;  %v1010_v48 = vsel %vm302_vm3, 1.0, %v1210_v8  ;;  %vm297_vm6 = vcmp.eq.s32.totalorder %v119_v22, 1  ;;  %vm298_vm7 = vcmp.eq.s32.totalorder %v120_v23, 1  ;;  %v1007_v49 = vsel %vm299_vm4, 1.0, %v1210_v8 }
  0x25   :  { %v1008_v50 = vsel %vm300_vm5, 1.0, %v1210_v8  ;;  %v1100_v51 = vpack.i.bf16 %v1010_v48, %v1009_v47  ;;  %v1005_v52 = vsel %vm297_vm6, 1.0, %v1210_v8  ;;  %v1006_v53 = vsel %vm298_vm7, 1.0, %v1210_v8 }
  0x26   :  { %1049 = vperm.xlu0 %1042, %v1048_v37   ;;  %v1095_v54 = vpack.i.bf16 %v1008_v50, %v1007_v49  ;;  %vm307_vm8 = vcmp.eq.s32.totalorder %v129_v35, 1  ;;  %vm308_vm9 = vcmp.eq.s32.totalorder %v130_v36, 1  ;;  %v1090_v55 = vpack.i.bf16 %v1006_v53, %v1005_v52 }
  0x27   :  { %vm305_vm10 = vcmp.eq.s32.totalorder %v1306_v15, 1  ;;  %vm306_vm11 = vcmp.eq.s32.totalorder %v1311_v16, 1  ;;  %vm303_vm12 = vcmp.eq.s32.totalorder %v1272_v2, 1  ;;  %vm304_vm13 = vcmp.eq.s32.totalorder %v1277_v3, 1 }
  0x28   :  { %v1015_v56 = vsel %vm307_vm8, 1.0, %v1210_v8  ;;  %v1016_v57 = vsel %vm308_vm9, 1.0, %v1210_v8  ;;  %v1013_v58 = vsel %vm305_vm10, 1.0, %v1210_v8  ;;  %v1014_v59 = vsel %vm306_vm11, 1.0, %v1210_v8 }
  0x29   :  { %v1115_v60 = vpack.i.bf16 %v1016_v57, %v1015_v56  ;;  %v1011_v61 = vsel %vm303_vm12, 1.0, %v1210_v8  ;;  %v1012_v62 = vsel %vm304_vm13, 1.0, %v1210_v8  ;;  %v1110_v63 = vpack.i.bf16 %v1014_v59, %v1013_v58 }
  0x2a   :  { %v1105_v0 = vpack.i.bf16 %v1012_v62, %v1011_v61  ;;  %vm309_vm14 = vcmp.eq.s32.totalorder %v1338_v32, 1  ;;  %vm310_vm15 = vcmp.eq.s32.totalorder %v1343_v33, 1  ;;  %v1388_v9 = vperm.slane %v133_v7, 1 }
  0x2b   :  { %1086 = vperm.xlu2 %1064, %v1085_v42   ;;  %v1017_v1 = vsel %vm309_vm14, 1.0, %v1210_v8  ;;  %v1018_v2 = vsel %vm310_vm15, 1.0, %v1210_v8  ;;  %v1390_v13 = vperm.slane %v133_v7, 0 }
  0x2c   :  { %1081 = vperm.xlu1 %1053, %v1080_v45   ;;  %v1120_v3 = vpack.i.bf16 %v1018_v2, %v1017_v1 }
  0x2e   :  { %1076 = vperm.xlu0 %1042, %v1075_v46  }
  0x33   :  { %1101 = vperm.xlu2 %1064, %v1100_v51  }
  0x34   :  { %1096 = vperm.xlu1 %1053, %v1095_v54  }
  0x36   :  { %1091 = vperm.xlu0 %1042, %v1090_v55  }
  0x3b   :  { %1116 = vperm.xlu2 %1064, %v1115_v60  }
  0x3c   :  { %1111 = vperm.xlu1 %1053, %v1110_v63  }
  0x3e   :  { %1106 = vperm.xlu0 %1042, %v1105_v0  }
  0x46   :  { %1121 = vperm.xlu0 %1042, %v1120_v3  }
  0x75   :  { %v1381_v4 = vpop.permute.xlu2 %1066 }
  0x7d   :  { %v1383_v5 = vpop.permute.xlu2 %1071 }
  0x7e   :  { %v1073_v7 = vunpack.i.l.bf16 %v1383_v5 }
  0x85   :  { %v1087_v6 = vpop.permute.xlu2 %1086 }
  0x86   :  { %v1089_v10 = vunpack.i.h.bf16 %v1087_v6  ;;  %v1088_v11 = vunpack.i.l.bf16 %v1087_v6  ;;  %v1074_v6 = vunpack.i.h.bf16 %v1383_v5 }
  0x88   :  { %v425_v8 = vmul.f32 %v1089_v10, %v1388_v9  ;;  %v424_v15 = vmul.f32 %v1088_v11, %v1388_v9 }
  0x8d   :  { %v1102_v18 = vpop.permute.xlu2 %1101 }
  0x8e   :  { %v1056_v12 = vpop.permute.xlu1 %1055  ;;  %v1104_v19 = vunpack.i.h.bf16 %v1102_v18  ;;  %v1103_v20 = vunpack.i.l.bf16 %v1102_v18  ;;  %v273_v18 = vmul.f32 %v1073_v7, %v1390_v13 }
  0x8f   :  { %v1058_v46 = vunpack.i.h.bf16 %v1056_v12  ;;  %v1057_v47 = vunpack.i.l.bf16 %v1056_v12  ;;  %v1069_v12 = vunpack.i.h.bf16 %v1381_v4 }
  0x90   :  { %v1045_v14 = vpop.permute.xlu0 %1044  ;;  %v431_v26 = vmul.f32 %v1104_v19, %v1388_v9  ;;  %v430_v27 = vmul.f32 %v1103_v20, %v1388_v9 }
  0x91   :  { %v1047_v16 = vunpack.i.h.bf16 %v1045_v14  ;;  %v1046_v17 = vunpack.i.l.bf16 %v1045_v14  ;;  %v268_v55 = vmul.f32 %v1058_v46, %v1390_v13  ;;  %v267_v56 = vmul.f32 %v1057_v47, %v1390_v13 }
  0x92   :  { %v1068_v14 = vunpack.i.l.bf16 %v1381_v4 }
  0x93   :  { %v264_v21 = vmul.f32 %v1047_v16, %v1390_v13  ;;  %v263_v22 = vmul.f32 %v1046_v17, %v1390_v13  ;;  %v274_v17 = vmul.f32 %v1074_v6, %v1390_v13 }
  0x95   :  { %v1396_v23 = vadd.f32 %v425_v8, %v264_v21  ;;  %v1398_v24 = vadd.f32 %v424_v15, %v263_v22  ;;  %v1117_v35 = vpop.permute.xlu2 %1116 }
  0x96   :  { %v1061_v25 = vpop.permute.xlu1 %1060  ;;  %v1119_v37 = vunpack.i.h.bf16 %v1117_v35  ;;  %v1118_v38 = vunpack.i.l.bf16 %v1117_v35 }
  0x97   :  { %v1063_v28 = vunpack.i.h.bf16 %v1061_v25  ;;  %v1062_v29 = vunpack.i.l.bf16 %v1061_v25  ;;  %v272_v25 = vmul.f32 %v1069_v12, %v1390_v13 }
  0x98   :  { %v1050_v30 = vpop.permute.xlu0 %1049  ;;  %v437_v42 = vmul.f32 %v1119_v37, %v1388_v9  ;;  %v436_v43 = vmul.f32 %v1118_v38, %v1388_v9 }
  0x99   :  { %v270_v31 = vmul.f32 %v1063_v28, %v1390_v13  ;;  %v269_v32 = vmul.f32 %v1062_v29, %v1390_v13  ;;  %v1052_v50 = vunpack.i.h.bf16 %v1050_v30  ;;  %v1051_v51 = vunpack.i.l.bf16 %v1050_v30 }
  0x9b   :  { %v1404_v33 = vadd.f32 %v430_v27, %v269_v32  ;;  %v1406_v34 = vadd.f32 %v431_v26, %v270_v31  ;;  %v266_v62 = vmul.f32 %v1052_v50, %v1390_v13  ;;  %v265_v63 = vmul.f32 %v1051_v51, %v1390_v13 }
  0x9c   :  { %v271_v26 = vmul.f32 %v1068_v14, %v1390_v13 }
  0x9e   :  { %v1408_v36 = vpop.permute.xlu1 %1081 }
  0x9f   :  { %v1084_v32 = vunpack.i.h.bf16 %v1408_v36  ;;  %v1083_v35 = vunpack.i.l.bf16 %v1408_v36 }
  0xa0   :  { %v1077_v39 = vpop.permute.xlu0 %1076 }
  0xa1   :  { %v1079_v40 = vunpack.i.h.bf16 %v1077_v39  ;;  %v1078_v41 = vunpack.i.l.bf16 %v1077_v39 }
  0xa3   :  { %v276_v44 = vmul.f32 %v1079_v40, %v1390_v13  ;;  %v275_v45 = vmul.f32 %v1078_v41, %v1390_v13  ;;  %v278_v40 = vmul.f32 %v1084_v32, %v1390_v13  ;;  %v277_v41 = vmul.f32 %v1083_v35, %v1390_v13 }
  0xa5   :  { %v1414_v48 = vadd.f32 %v437_v42, %v276_v44  ;;  %v1416_v49 = vadd.f32 %v436_v43, %v275_v45 }
  0xa6   :  { %v1097_v52 = vpop.permute.xlu1 %1096 }
  0xa7   :  { %v1099_v53 = vunpack.i.h.bf16 %v1097_v52  ;;  %v1098_v54 = vunpack.i.l.bf16 %v1097_v52 }
  0xa8   :  { %v1092_v57 = vpop.permute.xlu0 %1091 }
  0xa9   :  { %v429_v58 = vmul.f32 %v1099_v53, %v1388_v9  ;;  %v428_v59 = vmul.f32 %v1098_v54, %v1388_v9  ;;  %v1094_v60 = vunpack.i.h.bf16 %v1092_v57  ;;  %v1093_v61 = vunpack.i.l.bf16 %v1092_v57 }
  0xab   :  { %v1424_v0 = vadd.f32 %v428_v59, %v267_v56  ;;  %v1426_v1 = vadd.f32 %v429_v58, %v268_v55  ;;  %v427_v2 = vmul.f32 %v1094_v60, %v1388_v9  ;;  %v426_v3 = vmul.f32 %v1093_v61, %v1388_v9 }
  0xad   :  { %v1432_v10 = vadd.f32 %v426_v3, %v265_v63  ;;  %v1434_v11 = vadd.f32 %v427_v2, %v266_v62 }
  0xae   :  { %v1112_v8 = vpop.permute.xlu1 %1111 }
  0xaf   :  { %v1114_v15 = vunpack.i.h.bf16 %v1112_v8  ;;  %v1113_v16 = vunpack.i.l.bf16 %v1112_v8 }
  0xb0   :  { %v1107_v19 = vpop.permute.xlu0 %1106 }
  0xb1   :  { %v435_v20 = vmul.f32 %v1114_v15, %v1388_v9  ;;  %v434_v5 = vmul.f32 %v1113_v16, %v1388_v9  ;;  %v1109_v21 = vunpack.i.h.bf16 %v1107_v19  ;;  %v1108_v22 = vunpack.i.l.bf16 %v1107_v19 }
  0xb3   :  { %v1444_v27 = vadd.f32 %v435_v20, %v274_v17  ;;  %v1446_v4 = vadd.f32 %v434_v5, %v273_v18  ;;  %v433_v28 = vmul.f32 %v1109_v21, %v1388_v9  ;;  %v432_v29 = vmul.f32 %v1108_v22, %v1388_v9 }
  0xb5   :  { %v1450_v30 = vadd.f32 %v433_v28, %v272_v25  ;;  %v1452_v31 = vadd.f32 %v432_v29, %v271_v26 }
  0xb8   :  { %v1122_v37 = vpop.permute.xlu0 %1121 }
  0xb9   :  { %v1124_v38 = vunpack.i.h.bf16 %v1122_v37  ;;  %v1123_v39 = vunpack.i.l.bf16 %v1122_v37 }
  0xbb   :  { %v439_v42 = vmul.f32 %v1124_v38, %v1388_v9  ;;  %v438_v43 = vmul.f32 %v1123_v39, %v1388_v9 }
  0xbd   :  { %v1460_v44 = vadd.f32 %v439_v42, %v278_v40  ;;  %v1462_v45 = vadd.f32 %v438_v43, %v277_v41 }
  0xbe LB: > { %1195 = dma.done.wait [#allocation4], 16  ;;  %s1205_s5 = sphi %s1203_s5, %s461_s5  }
  0xbf   : > { %1196 = vsyncadd [#allocation4], 4294967280 }
  0xc0   : > { %1197 = dma.done.wait [#allocation4 + $0x1], 16 }
  0xc1   : > { %1198 = vsyncadd [#allocation4 + $0x1], 4294967280  ;;  %s461_s5 = sadd.s32 1, %s1205_s5  }
  0xc2   : > { %p458_p1 = scmp.ge.s32.totalorder %s461_s5, 128  }
  0xc3   :  { %v472_v13 = vld [vmem:[#allocation2 + $0x20] sm:$0xff] (%p458_p1)  ;;  %v470_v46 = vld [vmem:[#allocation2 + $0x10] sm:$0xff] (%p458_p1)  ;;  %vm532_vm0 = vcmask (%p458_p1), 261120   ;;  %v473_v54 = vld [vmem:[#allocation2 + $0x28] sm:$0xff] (%p458_p1) }
  0xc4   :  { %460 = sbr.rel (!%p458_p1) target bundleno = 190 (0xbe), region = 136  ;;  %v488_v36 = vld [vmem:[#allocation3 + $0x20] sm:$0xff] (%p458_p1)  ;;  %v486_v47 = vld [vmem:[#allocation3 + $0x10] sm:$0xff] (%p458_p1)  ;;  %v489_v55 = vld [vmem:[#allocation3 + $0x28] sm:$0xff] (%p458_p1) }
  0xc5   :  { %v504_v9 = vadd.f32 (%p458_p1), %v488_v36, %v472_v13  ;;  %v468_v50 = vld [vmem:[#allocation2] sm:$0xff] (%p458_p1)  ;;  %v502_v52 = vadd.f32 (%p458_p1), %v486_v47, %v470_v46  ;;  %v471_v56 = vld [vmem:[#allocation2 + $0x18] sm:$0xff] (%p458_p1)  ;;  %v505_v58 = vadd.f32 (%p458_p1), %v489_v55, %v473_v54  ;;  %v469_v60 = vld [vmem:[#allocation2 + $0x8] sm:$0xff] (%p458_p1) }
  0xc6   :  { %v484_v51 = vld [vmem:[#allocation3] sm:$0xff] (%p458_p1)  ;;  %v487_v59 = vld [vmem:[#allocation3 + $0x18] sm:$0xff] (%p458_p1)  ;;  %v485_v61 = vld [vmem:[#allocation3 + $0x8] sm:$0xff] (%p458_p1) }
  0xc7   :  { %v500_v53 = vadd.f32 (%p458_p1), %v484_v51, %v468_v50  ;;  %v1465_v57 = vadd.f32 (%p458_p1), %v504_v9, %v1424_v0  ;;  %v1468_v62 = vadd.f32 (%p458_p1), %v502_v52, %v1432_v10  ;;  %v503_v2 = vadd.f32 (%p458_p1), %v487_v59, %v471_v56  ;;  %v476_v14 = vld [vmem:[#allocation2 + $0x40] sm:$0xff] (%p458_p1)  ;;  %v474_v15 = vld [vmem:[#allocation2 + $0x30] sm:$0xff] (%p458_p1)  ;;  %v475_v17 = vld [vmem:[#allocation2 + $0x38] sm:$0xff] (%p458_p1) }
  0xc8   :  { %v501_v3 = vadd.f32 (%p458_p1), %v485_v61, %v469_v60  ;;  %v1480_v10 = vadd.f32 (%p458_p1), %v505_v58, %v1426_v1  ;;  %v492_v8 = vld [vmem:[#allocation3 + $0x40] sm:$0xff] (%p458_p1)  ;;  %v490_v16 = vld [vmem:[#allocation3 + $0x30] sm:$0xff] (%p458_p1)  ;;  %v491_v18 = vld [vmem:[#allocation3 + $0x38] sm:$0xff] (%p458_p1) }
  0xc9   :  { %v1471_v63 = vadd.f32 %v500_v53, %v1398_v24  ;;  %v545_v6 = vsel %vm532_vm0, %v1465_v57, 0.0  ;;  %v539_v0 = vsel %vm532_vm0, %v1468_v62, 0.0  ;;  %v1483_v24 = vadd.f32 %v503_v2, %v1434_v11  ;;  %v479_v25 = vld [vmem:[#allocation2 + $0x58] sm:$0xff]  ;;  %v477_v29 = vld [vmem:[#allocation2 + $0x48] sm:$0xff]  ;;  %v478_v35 = vld [vmem:[#allocation2 + $0x50] sm:$0xff] }
  0xca   :  { %546 = vadd.xlane.f32.xlu2 %v545_v6  ;;  %540 = vadd.xlane.f32.xlu1 %v539_v0  ;;  %v1486_v12 = vadd.f32 %v501_v3, %v1396_v23  ;;  %v548_v19 = vsel %vm532_vm0, %v1480_v10, 0.0  ;;  %v508_v20 = vadd.f32 %v492_v8, %v476_v14  ;;  %v506_v5 = vadd.f32 %v490_v16, %v474_v15  ;;  %v495_v26 = vld [vmem:[#allocation3 + $0x58] sm:$0xff]  ;;  %v493_v32 = vld [vmem:[#allocation3 + $0x48] sm:$0xff]  ;;  %v494_v37 = vld [vmem:[#allocation3 + $0x50] sm:$0xff] }
  0xcb   :  { %v533_v7 = vsel %vm532_vm0, %v1471_v63, 0.0  ;;  %v542_v1 = vsel %vm532_vm0, %v1483_v24, 0.0  ;;  %v507_v21 = vadd.f32 %v491_v18, %v475_v17  ;;  %v511_v39 = vadd.f32 %v495_v26, %v479_v25  ;;  %v482_v43 = vld [vmem:[#allocation2 + $0x70] sm:$0xff]  ;;  %v480_v46 = vld [vmem:[#allocation2 + $0x60] sm:$0xff]  ;;  %v481_v47 = vld [vmem:[#allocation2 + $0x68] sm:$0xff] }
  0xcc   :  { %534 = vadd.xlane.f32.xlu0 %v533_v7  ;;  %v536_v11 = vsel %vm532_vm0, %v1486_v12, 0.0  ;;  %v1495_v23 = vadd.f32 %v508_v20, %v1452_v31  ;;  %v1498_v22 = vadd.f32 %v506_v5, %v1404_v33  ;;  %v509_v40 = vadd.f32 %v493_v32, %v477_v29  ;;  %v498_v13 = vld [vmem:[#allocation3 + $0x70] sm:$0xff]  ;;  %v496_v9 = vld [vmem:[#allocation3 + $0x60] sm:$0xff]  ;;  %v497_v50 = vld [vmem:[#allocation3 + $0x68] sm:$0xff] }
  0xcd   :  { %v1501_v28 = vadd.f32 %v507_v21, %v1406_v34  ;;  %v510_v41 = vadd.f32 %v494_v37, %v478_v35  ;;  %v1510_v34 = vadd.f32 %v511_v39, %v1444_v27  ;;  %v514_v52 = vadd.f32 %v498_v13, %v482_v43  ;;  %v483_v58 = vld [vmem:[#allocation2 + $0x78] sm:$0xff] }
  0xce   :  { %v557_v38 = vsel %vm532_vm0, %v1495_v23, 0.0  ;;  %v551_v31 = vsel %vm532_vm0, %v1498_v22, 0.0  ;;  %v1513_v42 = vadd.f32 %v509_v40, %v1450_v30  ;;  %v512_v53 = vadd.f32 %v496_v9, %v480_v46  ;;  %v499_v59 = vld [vmem:[#allocation3 + $0x78] sm:$0xff] }
  0xcf   :  { %v554_v33 = vsel %vm532_vm0, %v1501_v28, 0.0  ;;  %v1516_v36 = vadd.f32 %v510_v41, %v1446_v4  ;;  %v566_v51 = vsel %vm532_vm0, %v1510_v34, 0.0  ;;  %v513_v54 = vadd.f32 %v497_v50, %v481_v47 }
  0xd0   :  { %v560_v27 = vsel %vm532_vm0, %v1513_v42, 0.0  ;;  %v1525_v4 = vadd.f32 %v514_v52, %v1462_v45  ;;  %v1528_v55 = vadd.f32 %v512_v53, %v1416_v49  ;;  %v515_v45 = vadd.f32 %v499_v59, %v483_v58 }
  0xd1   :  { %v563_v30 = vsel %vm532_vm0, %v1516_v36, 0.0  ;;  %v1531_v56 = vadd.f32 %v513_v54, %v1414_v48  ;;  %v1211_v3 = vmov 32.0  }
  0xd2   :  { %549 = vadd.xlane.f32.xlu2 %v548_v19  ;;  %543 = vadd.xlane.f32.xlu1 %v542_v1  ;;  %v575_v60 = vsel %vm532_vm0, %v1525_v4, 0.0  ;;  %v569_v61 = vsel %vm532_vm0, %v1528_v55, 0.0  ;;  %v1540_v49 = vadd.f32 %v515_v45, %v1460_v44  ;;  %1127 = vrcp.f32 %v1211_v3 }
  0xd3   :  { %v572_v2 = vsel %vm532_vm0, %v1531_v56, 0.0 }
  0xd4   :  { %537 = vadd.xlane.f32.xlu0 %v536_v11  ;;  %v578_v48 = vsel %vm532_vm0, %v1540_v49, 0.0 }
  0xd8   :  { %v1128_v6 = vpop.eup %1127 }
  0xd9   :  { %v582_v0 = vmul.f32 32.0, %v1128_v6  ;;  %vm586_vm1 = vweird.f32 %v1128_v6 }
  0xda   :  { %558 = vadd.xlane.f32.xlu2 %v557_v38  ;;  %555 = vadd.xlane.f32.xlu1 %v554_v33 }
  0xdb   :  { %v583_v7 = vsub.f32 1.0, %v582_v0 }
  0xdc   :  { %552 = vadd.xlane.f32.xlu0 %v551_v31 }
  0xdd   :  { %v584_v14 = vmul.f32 %v1128_v6, %v583_v7 }
  0xdf   :  { %v585_v8 = vadd.f32 %v1128_v6, %v584_v14 }
  0xe1   :  { %v1544_v15 = vsel %vm586_vm1, %v1128_v6, %v585_v8 }
  0xe2   :  { %567 = vadd.xlane.f32.xlu2 %v566_v51  ;;  %564 = vadd.xlane.f32.xlu1 %v563_v30 }
  0xe4   :  { %561 = vadd.xlane.f32.xlu0 %v560_v27 }
  0xea   :  { %576 = vadd.xlane.f32.xlu2 %v575_v60  ;;  %573 = vadd.xlane.f32.xlu1 %v572_v2 }
  0xec   :  { %570 = vadd.xlane.f32.xlu0 %v569_v61 }
  0xf4   :  { %579 = vadd.xlane.f32.xlu0 %v578_v48 }
 0x13d   :  { %v547_v16 = vpop.xlane.xlu2 %546  ;;  %v541_v17 = vpop.xlane.xlu1 %540 }
 0x13e   :  { %v590_v44 = vmul.f32 %v1544_v15, %v541_v17  ;;  %v592_v31 = vmul.f32 %v1544_v15, %v547_v16 }
 0x13f   :  { %v535_v18 = vpop.xlane.xlu0 %534 }
 0x140   :  { %v588_v19 = vmul.f32 %v1544_v15, %v535_v18  ;;  %v1549_v20 = vsub.f32 %v1468_v62, %v590_v44 }
 0x142   :  { %v1552_v1 = vsub.f32 %v1471_v63, %v588_v19  ;;  %v622_v11 = vmul.f32 %v1549_v20, %v1549_v20 }
 0x144   :  { %v620_v5 = vmul.f32 %v1552_v1, %v1552_v1  ;;  %v642_v25 = vsel %vm532_vm0, %v622_v11, 0.0 }
 0x145   :  { %v550_v21 = vpop.xlane.xlu2 %549  ;;  %v544_v32 = vpop.xlane.xlu1 %543  ;;  %643 = vadd.xlane.f32.xlu0 %v642_v25 }
 0x146   :  { %v636_v26 = vsel %vm532_vm0, %v620_v5, 0.0  ;;  %v593_v29 = vmul.f32 %v1544_v15, %v550_v21  ;;  %v591_v63 = vmul.f32 %v1544_v15, %v544_v32 }
 0x147   :  { %637 = vadd.xlane.f32.xlu1 %v636_v26  ;;  %v538_v62 = vpop.xlane.xlu0 %537 }
 0x148   :  { %v589_v35 = vmul.f32 %v1544_v15, %v538_v62  ;;  %v1564_v37 = vsub.f32 %v1480_v10, %v593_v29  ;;  %v1567_v38 = vsub.f32 %v1483_v24, %v591_v63 }
 0x14a   :  { %v1570_v39 = vsub.f32 %v1486_v12, %v589_v35  ;;  %v625_v33 = vmul.f32 %v1564_v37, %v1564_v37  ;;  %v623_v40 = vmul.f32 %v1567_v38, %v1567_v38  ;;  %v1583_v12 = vsub.f32 %v1465_v57, %v592_v31 }
 0x14c   :  { %v621_v41 = vmul.f32 %v1570_v39, %v1570_v39  ;;  %v651_v10 = vsel %vm532_vm0, %v625_v33, 0.0  ;;  %v645_v24 = vsel %vm532_vm0, %v623_v40, 0.0  ;;  %v624_v30 = vmul.f32 %v1583_v12, %v1583_v12 }
 0x14d   :  { %v559_v43 = vpop.xlane.xlu2 %558  ;;  %652 = vadd.xlane.f32.xlu0 %v651_v10  ;;  %v556_v47 = vpop.xlane.xlu1 %555 }
 0x14e   :  { %v639_v13 = vsel %vm532_vm0, %v621_v41, 0.0  ;;  %v596_v46 = vmul.f32 %v1544_v15, %v559_v43  ;;  %v595_v52 = vmul.f32 %v1544_v15, %v556_v47  ;;  %v648_v60 = vsel %vm532_vm0, %v624_v30, 0.0 }
 0x14f   :  { %646 = vadd.xlane.f32.xlu1 %v645_v24  ;;  %v553_v9 = vpop.xlane.xlu0 %552  ;;  %640 = vadd.xlane.f32.xlu2 %v639_v13 }
 0x150   :  { %v594_v50 = vmul.f32 %v1544_v15, %v553_v9  ;;  %v1588_v51 = vsub.f32 %v1495_v23, %v596_v46  ;;  %v1601_v54 = vsub.f32 %v1501_v28, %v595_v52 }
 0x152   :  { %v1592_v27 = vsub.f32 %v1498_v22, %v594_v50  ;;  %v628_v57 = vmul.f32 %v1588_v51, %v1588_v51  ;;  %v627_v3 = vmul.f32 %v1601_v54, %v1601_v54 }
 0x154   :  { %v626_v53 = vmul.f32 %v1592_v27, %v1592_v27  ;;  %v660_v23 = vsel %vm532_vm0, %v628_v57, 0.0  ;;  %v657_v8 = vsel %vm532_vm0, %v627_v3, 0.0 }
 0x155   :  { %v568_v58 = vpop.xlane.xlu2 %567  ;;  %661 = vadd.xlane.f32.xlu0 %v660_v23  ;;  %v565_v2 = vpop.xlane.xlu1 %564 }
 0x156   :  { %v654_v59 = vsel %vm532_vm0, %v626_v53, 0.0  ;;  %v599_v22 = vmul.f32 %v1544_v15, %v568_v58  ;;  %v598_v28 = vmul.f32 %v1544_v15, %v565_v2 }
 0x157   :  { %655 = vadd.xlane.f32.xlu1 %v654_v59  ;;  %v562_v61 = vpop.xlane.xlu0 %561  ;;  %649 = vadd.xlane.f32.xlu2 %v648_v60 }
 0x158   :  { %v597_v45 = vmul.f32 %v1544_v15, %v562_v61  ;;  %v1609_v48 = vsub.f32 %v1510_v34, %v599_v22  ;;  %v1622_v14 = vsub.f32 %v1516_v36, %v598_v28 }
 0x15a   :  { %v1615_v6 = vsub.f32 %v1513_v42, %v597_v45  ;;  %v631_v0 = vmul.f32 %v1609_v48, %v1609_v48  ;;  %v630_v5 = vmul.f32 %v1622_v14, %v1622_v14 }
 0x15c   :  { %v629_v7 = vmul.f32 %v1615_v6, %v1615_v6  ;;  %v669_v34 = vsel %vm532_vm0, %v631_v0, 0.0  ;;  %v666_v32 = vsel %vm532_vm0, %v630_v5, 0.0 }
 0x15d   :  { %v577_v16 = vpop.xlane.xlu2 %576  ;;  %670 = vadd.xlane.f32.xlu0 %v669_v34  ;;  %v574_v44 = vpop.xlane.xlu1 %573 }
 0x15e   :  { %v663_v17 = vsel %vm532_vm0, %v629_v7, 0.0  ;;  %v602_v18 = vmul.f32 %v1544_v15, %v577_v16  ;;  %v601_v36 = vmul.f32 %v1544_v15, %v574_v44 }
 0x15f   :  { %664 = vadd.xlane.f32.xlu1 %v663_v17  ;;  %v571_v42 = vpop.xlane.xlu0 %570  ;;  %658 = vadd.xlane.f32.xlu2 %v657_v8 }
 0x160   :  { %v600_v19 = vmul.f32 %v1544_v15, %v571_v42  ;;  %v1630_v11 = vsub.f32 %v1525_v4, %v602_v18  ;;  %v1643_v29 = vsub.f32 %v1531_v56, %v601_v36 }
 0x162   :  { %v1636_v21 = vsub.f32 %v1528_v55, %v600_v19  ;;  %v634_v25 = vmul.f32 %v1630_v11, %v1630_v11  ;;  %v633_v35 = vmul.f32 %v1643_v29, %v1643_v29 }
 0x164   :  { %v632_v26 = vmul.f32 %v1636_v21, %v1636_v21  ;;  %v678_v4 = vsel %vm532_vm0, %v634_v25, 0.0  ;;  %v675_v33 = vsel %vm532_vm0, %v633_v35, 0.0 }
 0x165   :  { %679 = vadd.xlane.f32.xlu0 %v678_v4  ;;  %v1691_v4 = vld [vmem:[%s1947_s6] ss:$0 sm:$0xff] }
 0x166   :  { %v672_v62 = vsel %vm532_vm0, %v632_v26, 0.0 }
 0x167   :  { %673 = vadd.xlane.f32.xlu1 %v672_v62  ;;  %v580_v63 = vpop.xlane.xlu0 %579  ;;  %667 = vadd.xlane.f32.xlu2 %v666_v32 }
 0x168   :  { %v603_v55 = vmul.f32 %v1544_v15, %v580_v63 }
 0x16a   :  { %v1652_v31 = vsub.f32 %v1540_v49, %v603_v55 }
 0x16c   :  { %v635_v56 = vmul.f32 %v1652_v31, %v1652_v31 }
 0x16e   :  { %v681_v40 = vsel %vm532_vm0, %v635_v56, 0.0 }
 0x16f   :  { %682 = vadd.xlane.f32.xlu1 %v681_v40  ;;  %676 = vadd.xlane.f32.xlu2 %v675_v33  ;;  %v1708_v33 = vld [vmem:[%s1948_s7] ss:$0 sm:$0xff] }
 0x1b8   :  { %v644_v10 = vpop.xlane.xlu0 %643 }
 0x1b9   :  { %v686_v24 = vmul.f32 %v644_v10, %v1544_v15 }
 0x1ba   :  { %v638_v41 = vpop.xlane.xlu1 %637 }
 0x1bb   :  { %v684_v43 = vmul.f32 %v638_v41, %v1544_v15  ;;  %v702_v46 = vadd.f32 1e-12, %v686_v24 }
 0x1bd   :  { %v700_v13 = vadd.f32 1e-12, %v684_v43  ;;  %vm742_vm4 = vweird.f32 %v702_v46 }
 0x1bf   :  { %1129 = vrsqrt.f32 %v700_v13  ;;  %vm722_vm2 = vweird.f32 %v700_v13 }
 0x1c0   :  { %1131 = vrsqrt.f32 %v702_v46  ;;  %v653_v9 = vpop.xlane.xlu0 %652 }
 0x1c1   :  { %v689_v52 = vmul.f32 %v653_v9, %v1544_v15 }
 0x1c2   :  { %v647_v49 = vpop.xlane.xlu1 %646  ;;  %v641_v50 = vpop.xlane.xlu2 %640 }
 0x1c3   :  { %v687_v47 = vmul.f32 %v647_v49, %v1544_v15  ;;  %v685_v57 = vmul.f32 %v641_v50, %v1544_v15  ;;  %v1665_v23 = vadd.f32 1e-12, %v689_v52 }
 0x1c5   :  { %v1130_v30 = vpop.eup %1129  ;;  %v1663_v53 = vadd.f32 1e-12, %v687_v47  ;;  %v1667_v22 = vadd.f32 1e-12, %v685_v57  ;;  %vm772_vm9 = vweird.f32 %v1665_v23 }
 0x1c6   :  { %v1132_v58 = vpop.eup %1131  ;;  %v717_v59 = vmul.f32 %v1130_v30, %v700_v13  ;;  %vm723_vm3 = vweird.f32 %v1130_v30 }
 0x1c7   :  { %v737_v60 = vmul.f32 %v1132_v58, %v702_v46  ;;  %1133 = vrsqrt.f32 %v1663_v53  ;;  %vm743_vm5 = vweird.f32 %v1132_v58  ;;  %vm752_vm6 = vweird.f32 %v1663_v53  ;;  %vm724_vm7 = vmor %vm722_vm2, %vm723_vm3 }
 0x1c8   :  { %v718_v61 = vmul.f32 %v1130_v30, %v717_v59  ;;  %1135 = vrsqrt.f32 %v1667_v22  ;;  %v662_v3 = vpop.xlane.xlu0 %661  ;;  %vm744_vm8 = vmor %vm742_vm4, %vm743_vm5  ;;  %vm732_vm14 = vweird.f32 %v1667_v22 }
 0x1c9   :  { %v738_v2 = vmul.f32 %v1132_v58, %v737_v60  ;;  %1137 = vrsqrt.f32 %v1665_v23  ;;  %v692_v8 = vmul.f32 %v662_v3, %v1544_v15 }
 0x1ca   :  { %v719_v45 = vmul.f32 0.5, %v718_v61  ;;  %v656_v28 = vpop.xlane.xlu1 %655  ;;  %v650_v7 = vpop.xlane.xlu2 %649 }
 0x1cb   :  { %v739_v0 = vmul.f32 0.5, %v738_v2  ;;  %v690_v34 = vmul.f32 %v656_v28, %v1544_v15  ;;  %v688_v17 = vmul.f32 %v650_v7, %v1544_v15  ;;  %v1697_v63 = vadd.f32 1e-12, %v692_v8 }
 0x1cc   :  { %v720_v16 = vsub.f32 1.5, %v719_v45 }
 0x1cd   :  { %v1675_v18 = vpop.eup %1133  ;;  %v740_v42 = vsub.f32 1.5, %v739_v0  ;;  %v1677_v44 = vadd.f32 1e-12, %v690_v34  ;;  %v1684_v25 = vadd.f32 1e-12, %v688_v17  ;;  %vm802_vm4 = vweird.f32 %v1697_v63 }
 0x1ce   :  { %v1679_v19 = vpop.eup %1135  ;;  %v721_v36 = vmul.f32 %v1130_v30, %v720_v16  ;;  %v747_v5 = vmul.f32 %v1675_v18, %v1663_v53  ;;  %vm753_vm10 = vweird.f32 %v1675_v18 }
 0x1cf   :  { %v1686_v26 = vpop.eup %1137  ;;  %v741_v32 = vmul.f32 %v1132_v58, %v740_v42  ;;  %v727_v62 = vmul.f32 %v1679_v19, %v1667_v22  ;;  %1139 = vrsqrt.f32 %v1677_v44  ;;  %vm733_vm11 = vweird.f32 %v1679_v19  ;;  %vm754_vm13 = vmor %vm752_vm6, %vm753_vm10 }
 0x1d0   :  { %v725_v55 = vsel %vm724_vm7, %v1130_v30, %v721_v36  ;;  %v748_v35 = vmul.f32 %v1675_v18, %v747_v5  ;;  %v767_v56 = vmul.f32 %v1686_v26, %v1665_v23  ;;  %1141 = vrsqrt.f32 %v1684_v25  ;;  %vm734_vm1 = vmor %vm732_vm14, %vm733_vm11 }
 0x1d1   :  { %v876_v40 = vmul.f32 %v725_v55, %v1552_v1  ;;  %v745_v41 = vsel %vm744_vm8, %v1132_v58, %v741_v32  ;;  %v728_v10 = vmul.f32 %v1679_v19, %v727_v62  ;;  %1143 = vrsqrt.f32 %v1697_v63  ;;  %v671_v32 = vpop.xlane.xlu0 %670 }
 0x1d2   :  { %v878_v43 = vmul.f32 %v745_v41, %v1549_v20  ;;  %v749_v24 = vmul.f32 0.5, %v748_v35  ;;  %v768_v13 = vmul.f32 %v1686_v26, %v767_v56  ;;  %v665_v46 = vpop.xlane.xlu1 %664  ;;  %v659_v1 = vpop.xlane.xlu2 %658  ;;  %vm773_vm12 = vweird.f32 %v1686_v26 }
 0x1d3   :  { %v896_v49 = vmul.f32 %v1691_v4, %v876_v40  ;;  %v729_v9 = vmul.f32 0.5, %v728_v10  ;;  %v691_v58 = vmul.f32 %v659_v1, %v1544_v15  ;;  %v693_v59 = vmul.f32 %v665_v46, %v1544_v15  ;;  %vm774_vm3 = vmor %vm772_vm9, %vm773_vm12 }
 0x1d4   :  { %v898_v47 = vmul.f32 %v1691_v4, %v878_v43  ;;  %v750_v50 = vsub.f32 1.5, %v749_v24  ;;  %v769_v52 = vmul.f32 0.5, %v768_v13  ;;  %vm782_vm15 = vweird.f32 %v1677_v44 }
 0x1d5   :  { %v1721_v20 = vpop.eup %1139  ;;  %v916_v57 = vadd.f32 %v1708_v33, %v896_v49  ;;  %v730_v30 = vsub.f32 1.5, %v729_v9  ;;  %v1743_v0 = vadd.f32 1e-12, %v691_v58  ;;  %vm762_vm2 = vweird.f32 %v1684_v25 }
 0x1d6   :  { %v918_v60 = vadd.f32 %v1708_v33, %v898_v47  ;;  %v751_v61 = vmul.f32 %v1675_v18, %v750_v50  ;;  %v770_v2 = vsub.f32 1.5, %v769_v52  ;;  %v777_v45 = vmul.f32 %v1721_v20, %v1677_v44  ;;  %v1730_v28 = vpop.eup %1141 }
 0x1d7   :  { %932 = vst.msk [vmem:[%s1949_s8] sm:$0xff] %vm532_vm0, %v916_v57  ;;  %v731_v3 = vmul.f32 %v1679_v19, %v730_v30  ;;  %v757_v34 = vmul.f32 %v1730_v28, %v1684_v25  ;;  %v1756_v22 = vadd.f32 1e-12, %v693_v59  ;;  %v1758_v8 = vpop.eup %1143  ;;  %1145 = vrsqrt.f32 %v1743_v0 }
 0x1d8   :  { %934 = vst.msk [vmem:[%s1949_s8 + $0x10] sm:$0xff] %vm532_vm0, %v918_v60  ;;  %v755_v7 = vsel %vm754_vm13, %v1675_v18, %v751_v61  ;;  %v771_v53 = vmul.f32 %v1686_v26, %v770_v2  ;;  %v778_v18 = vmul.f32 %v1721_v20, %v777_v45  ;;  %vm783_vm5 = vweird.f32 %v1721_v20 }
 0x1d9   :  { %v879_v16 = vmul.f32 %v755_v7, %v1567_v38  ;;  %v735_v17 = vsel %vm734_vm1, %v1679_v19, %v731_v3  ;;  %v758_v5 = vmul.f32 %v1730_v28, %v757_v34  ;;  %v797_v38 = vmul.f32 %v1758_v8, %v1697_v63  ;;  %vm784_vm7 = vmor %vm782_vm15, %vm783_vm5 }
 0x1da   :  { %v877_v42 = vmul.f32 %v735_v17, %v1570_v39  ;;  %v775_v36 = vsel %vm774_vm3, %v1686_v26, %v771_v53  ;;  %v779_v23 = vmul.f32 0.5, %v778_v18  ;;  %v668_v55 = vpop.xlane.xlu2 %667  ;;  %v674_v26 = vpop.xlane.xlu1 %673  ;;  %1147 = vrsqrt.f32 %v1756_v22 }
 0x1db   :  { %v899_v19 = vmul.f32 %v1691_v4, %v879_v16  ;;  %v881_v62 = vmul.f32 %v775_v36, %v1564_v37  ;;  %v759_v56 = vmul.f32 0.5, %v758_v5  ;;  %v798_v39 = vmul.f32 %v1758_v8, %v797_v38 }
 0x1dc   :  { %v897_v35 = vmul.f32 %v1691_v4, %v877_v42  ;;  %v780_v10 = vsub.f32 1.5, %v779_v23  ;;  %vm763_vm6 = vweird.f32 %v1730_v28  ;;  %v695_v9 = vmul.f32 %v671_v32, %v1544_v15 }
 0x1dd   :  { %v919_v40 = vadd.f32 %v1708_v33, %v899_v19  ;;  %v901_v41 = vmul.f32 %v1691_v4, %v881_v62  ;;  %v760_v43 = vsub.f32 1.5, %v759_v56  ;;  %v799_v24 = vmul.f32 0.5, %v798_v39  ;;  %v1784_v13 = vpop.eup %1145  ;;  %vm764_vm9 = vmor %vm762_vm2, %vm763_vm6 }
 0x1de   :  { %v917_v37 = vadd.f32 %v1708_v33, %v897_v35  ;;  %v781_v49 = vmul.f32 %v1721_v20, %v780_v10  ;;  %v694_v1 = vmul.f32 %v668_v55, %v1544_v15  ;;  %vm803_vm8 = vweird.f32 %v1758_v8 }
 0x1df   :  { %935 = vst.msk [vmem:[%s1949_s8 + $0x18] sm:$0xff] %vm532_vm0, %v919_v40  ;;  %v921_v46 = vadd.f32 %v1708_v33, %v901_v41  ;;  %v761_v47 = vmul.f32 %v1730_v28, %v760_v43  ;;  %v800_v50 = vsub.f32 1.5, %v799_v24  ;;  %v787_v52 = vmul.f32 %v1784_v13, %v1743_v0  ;;  %vm804_vm10 = vmor %vm802_vm4, %vm803_vm8 }
 0x1e0   :  { %933 = vst.msk [vmem:[%s1949_s8 + $0x8] sm:$0xff] %vm532_vm0, %v917_v37  ;;  %v785_v57 = vsel %vm784_vm7, %v1721_v20, %v781_v49  ;;  %v1815_v44 = vadd.f32 1e-12, %v695_v9  ;;  %v1817_v30 = vadd.f32 1e-12, %v694_v1  ;;  %v696_v58 = vmul.f32 %v674_v26, %v1544_v15  ;;  %v1148_v45 = vpop.eup %1147 }
 0x1e1   :  { %937 = vst.msk [vmem:[%s1949_s8 + $0x28] sm:$0xff] %vm532_vm0, %v921_v46  ;;  %v765_v59 = vsel %vm764_vm9, %v1730_v28, %v761_v47  ;;  %v882_v60 = vmul.f32 %v785_v57, %v1592_v27  ;;  %v801_v61 = vmul.f32 %v1758_v8, %v800_v50  ;;  %v788_v2 = vmul.f32 %v1784_v13, %v787_v52  ;;  %v680_v27 = vpop.xlane.xlu0 %679 }
 0x1e2   :  { %v880_v25 = vmul.f32 %v765_v59, %v1583_v12  ;;  %1149 = vrsqrt.f32 %v1815_v44  ;;  %v807_v28 = vmul.f32 %v1148_v45, %v1756_v22  ;;  %v677_v53 = vpop.xlane.xlu2 %676  ;;  %vm793_vm11 = vweird.f32 %v1784_v13 }
 0x1e3   :  { %v902_v20 = vmul.f32 %v1691_v4, %v882_v60  ;;  %v805_v3 = vsel %vm804_vm10, %v1758_v8, %v801_v61  ;;  %v789_v7 = vmul.f32 0.5, %v788_v2  ;;  %1151 = vrsqrt.f32 %v1817_v30  ;;  %v683_v8 = vpop.xlane.xlu1 %682 }
 0x1e4   :  { %v900_v34 = vmul.f32 %v1691_v4, %v880_v25  ;;  %v884_v16 = vmul.f32 %v805_v3, %v1588_v51  ;;  %v808_v17 = vmul.f32 %v1148_v45, %v807_v28  ;;  %v1836_v18 = vadd.f32 1e-12, %v696_v58 }
 0x1e5   :  { %v922_v12 = vadd.f32 %v1708_v33, %v902_v20  ;;  %v790_v63 = vsub.f32 1.5, %v789_v7  ;;  %v698_v5 = vmul.f32 %v680_v27, %v1544_v15  ;;  %v697_v38 = vmul.f32 %v677_v53, %v1544_v15 }
 0x1e6   :  { %v920_v42 = vadd.f32 %v1708_v33, %v900_v34  ;;  %v904_v36 = vmul.f32 %v1691_v4, %v884_v16  ;;  %vm792_vm12 = vweird.f32 %v1743_v0  ;;  %v809_v32 = vmul.f32 0.5, %v808_v17 }
 0x1e7   :  { %938 = vst.msk [vmem:[%s1949_s8 + $0x30] sm:$0xff] %vm532_vm0, %v922_v12  ;;  %v791_v51 = vmul.f32 %v1784_v13, %v790_v63  ;;  %1153 = vrsqrt.f32 %v1836_v18  ;;  %vm794_vm13 = vmor %vm792_vm12, %vm793_vm11  ;;  %v1856_v23 = vadd.f32 1e-12, %v698_v5  ;;  %v1858_v55 = vadd.f32 1e-12, %v697_v38 }
 0x1e8   :  { %v1150_v19 = vpop.eup %1149  ;;  %936 = vst.msk [vmem:[%s1949_s8 + $0x20] sm:$0xff] %vm532_vm0, %v920_v42  ;;  %v924_v62 = vadd.f32 %v1708_v33, %v904_v36  ;;  %v699_v0 = vmul.f32 %v683_v8, %v1544_v15  ;;  %v810_v56 = vsub.f32 1.5, %v809_v32  ;;  %vm813_vm14 = vweird.f32 %v1148_v45 }
 0x1e9   :  { %v795_v35 = vsel %vm794_vm13, %v1784_v13, %v791_v51  ;;  %v827_v39 = vmul.f32 %v1150_v19, %v1815_v44  ;;  %v1152_v26 = vpop.eup %1151  ;;  %1155 = vrsqrt.f32 %v1856_v23  ;;  %vm812_vm15 = vweird.f32 %v1756_v22 }
 0x1ea   :  { %940 = vst.msk [vmem:[%s1949_s8 + $0x40] sm:$0xff] %vm532_vm0, %v924_v62  ;;  %v883_v40 = vmul.f32 %v795_v35, %v1601_v54  ;;  %v811_v41 = vmul.f32 %v1148_v45, %v810_v56  ;;  %v817_v10 = vmul.f32 %v1152_v26, %v1817_v30  ;;  %vm814_vm1 = vmor %vm812_vm15, %vm813_vm14  ;;  %1157 = vrsqrt.f32 %v1858_v55 }
 0x1eb   :  { %v828_v15 = vmul.f32 %v1150_v19, %v827_v39  ;;  %v1873_v43 = vadd.f32 1e-12, %v699_v0  ;;  %vm832_vm2 = vweird.f32 %v1815_v44  ;;  %vm833_vm3 = vweird.f32 %v1150_v19 }
 0x1ec   :  { %v903_v37 = vmul.f32 %v1691_v4, %v883_v40  ;;  %v815_v13 = vsel %vm814_vm1, %v1148_v45, %v811_v41  ;;  %v818_v49 = vmul.f32 %v1152_v26, %v817_v10  ;;  %vm823_vm4 = vweird.f32 %v1152_v26  ;;  %vm834_vm5 = vmor %vm832_vm2, %vm833_vm3 }
 0x1ed   :  { %v1154_v24 = vpop.eup %1153  ;;  %v829_v46 = vmul.f32 0.5, %v828_v15  ;;  %v885_v9 = vmul.f32 %v815_v13, %v1615_v6  ;;  %1159 = vrsqrt.f32 %v1873_v43  ;;  %vm822_vm6 = vweird.f32 %v1817_v30 }
 0x1ee   :  { %v923_v54 = vadd.f32 %v1708_v33, %v903_v37  ;;  %v837_v22 = vmul.f32 %v1154_v24, %v1836_v18  ;;  %v819_v47 = vmul.f32 0.5, %v818_v49  ;;  %vm824_vm7 = vmor %vm822_vm6, %vm823_vm4  ;;  %vm843_vm8 = vweird.f32 %v1154_v24 }
 0x1ef   :  { %v830_v1 = vsub.f32 1.5, %v829_v46  ;;  %v1156_v50 = vpop.eup %1155  ;;  %v905_v52 = vmul.f32 %v1691_v4, %v885_v9  ;;  %vm842_vm9 = vweird.f32 %v1836_v18  ;;  %vm862_vm11 = vweird.f32 %v1856_v23 }
 0x1f0   :  { %939 = vst.msk [vmem:[%s1949_s8 + $0x38] sm:$0xff] %vm532_vm0, %v923_v54  ;;  %v838_v57 = vmul.f32 %v1154_v24, %v837_v22  ;;  %v820_v6 = vsub.f32 1.5, %v819_v47  ;;  %v857_v59 = vmul.f32 %v1156_v50, %v1856_v23  ;;  %v1158_v60 = vpop.eup %1157  ;;  %vm844_vm10 = vmor %vm842_vm9, %vm843_vm8  ;;  %vm863_vm12 = vweird.f32 %v1156_v50 }
 0x1f1   :  { %v831_v58 = vmul.f32 %v1150_v19, %v830_v1  ;;  %v925_v61 = vadd.f32 %v1708_v33, %v905_v52  ;;  %v847_v3 = vmul.f32 %v1158_v60, %v1858_v55  ;;  %vm853_vm13 = vweird.f32 %v1158_v60  ;;  %vm864_vm14 = vmor %vm862_vm11, %vm863_vm12 }
 0x1f2   :  { %v839_v2 = vmul.f32 0.5, %v838_v57  ;;  %v821_v25 = vmul.f32 %v1152_v26, %v820_v6  ;;  %v858_v20 = vmul.f32 %v1156_v50, %v857_v59  ;;  %vm852_vm15 = vweird.f32 %v1858_v55 }
 0x1f3   :  { %v835_v45 = vsel %vm834_vm5, %v1150_v19, %v831_v58  ;;  %941 = vst.msk [vmem:[%s1949_s8 + $0x48] sm:$0xff] %vm532_vm0, %v925_v61  ;;  %v1160_v44 = vpop.eup %1159  ;;  %v848_v53 = vmul.f32 %v1158_v60, %v847_v3  ;;  %vm854_vm1 = vmor %vm852_vm15, %vm853_vm13  ;;  %vm872_vm3 = vweird.f32 %v1873_v43 }
 0x1f4   :  { %v887_v7 = vmul.f32 %v835_v45, %v1609_v48  ;;  %v840_v28 = vsub.f32 1.5, %v839_v2  ;;  %v825_v27 = vsel %vm824_vm7, %v1152_v26, %v821_v25  ;;  %v859_v30 = vmul.f32 0.5, %v858_v20 }
 0x1f5   :  { %v886_v16 = vmul.f32 %v825_v27, %v1622_v14  ;;  %v867_v63 = vmul.f32 %v1160_v44, %v1873_v43  ;;  %v849_v48 = vmul.f32 0.5, %v848_v53  ;;  %vm873_vm2 = vweird.f32 %v1160_v44 }
 0x1f6   :  { %v907_v34 = vmul.f32 %v1691_v4, %v887_v7  ;;  %v841_v12 = vmul.f32 %v1154_v24, %v840_v28  ;;  %v860_v17 = vsub.f32 1.5, %v859_v30  ;;  %vm874_vm4 = vmor %vm872_vm3, %vm873_vm2 }
 0x1f7   :  { %v906_v42 = vmul.f32 %v1691_v4, %v886_v16  ;;  %v868_v36 = vmul.f32 %v1160_v44, %v867_v63  ;;  %v850_v51 = vsub.f32 1.5, %v849_v48 }
 0x1f8   :  { %v927_v8 = vadd.f32 %v1708_v33, %v907_v34  ;;  %v845_v18 = vsel %vm844_vm10, %v1154_v24, %v841_v12  ;;  %v861_v38 = vmul.f32 %v1156_v50, %v860_v17 }
 0x1f9   :  { %v888_v5 = vmul.f32 %v845_v18, %v1636_v21  ;;  %v926_v14 = vadd.f32 %v1708_v33, %v906_v42  ;;  %v869_v32 = vmul.f32 0.5, %v868_v36  ;;  %v851_v23 = vmul.f32 %v1158_v60, %v850_v51 }
 0x1fa   :  { %943 = vst.msk [vmem:[%s1949_s8 + $0x58] sm:$0xff] %vm532_vm0, %v927_v8  ;;  %v865_v62 = vsel %vm864_vm14, %v1156_v50, %v861_v38 }
 0x1fb   :  { %v908_v19 = vmul.f32 %v1691_v4, %v888_v5  ;;  %942 = vst.msk [vmem:[%s1949_s8 + $0x50] sm:$0xff] %vm532_vm0, %v926_v14  ;;  %v890_v21 = vmul.f32 %v865_v62, %v1630_v11  ;;  %v870_v0 = vsub.f32 1.5, %v869_v32  ;;  %v855_v56 = vsel %vm854_vm1, %v1158_v60, %v851_v23 }
 0x1fc   :  { %v889_v26 = vmul.f32 %v855_v56, %v1643_v29 }
 0x1fd   :  { %v928_v35 = vadd.f32 %v1708_v33, %v908_v19  ;;  %v910_v39 = vmul.f32 %v1691_v4, %v890_v21  ;;  %v871_v40 = vmul.f32 %v1160_v44, %v870_v0 }
 0x1fe   :  { %v909_v55 = vmul.f32 %v1691_v4, %v889_v26 }
 0x1ff   :  { %944 = vst.msk [vmem:[%s1949_s8 + $0x60] sm:$0xff] %vm532_vm0, %v928_v35  ;;  %v930_v11 = vadd.f32 %v1708_v33, %v910_v39  ;;  %v875_v41 = vsel %vm874_vm4, %v1160_v44, %v871_v40 }
 0x200   :  { %v891_v15 = vmul.f32 %v875_v41, %v1652_v31  ;;  %v929_v29 = vadd.f32 %v1708_v33, %v909_v55 }
 0x201   :  { %946 = vst.msk [vmem:[%s1949_s8 + $0x70] sm:$0xff] %vm532_vm0, %v930_v11 }
 0x202   :  { %v911_v10 = vmul.f32 %v1691_v4, %v891_v15  ;;  %945 = vst.msk [vmem:[%s1949_s8 + $0x68] sm:$0xff] %vm532_vm0, %v929_v29 }
 0x204   :  { %v931_v37 = vadd.f32 %v1708_v33, %v911_v10 }
 0x206   :  { %947 = vst.msk [vmem:[%s1949_s8 + $0x78] sm:$0xff] %vm532_vm0, %v931_v37 }
 0x207   :  { %952 = vsyncmov [#allocation4] }
 0x20a   :  { %s953_s9 = vpop.sfrf %952 }
 0x20b   :  { %p1019_p2 = scmp.ne.s32.totalorder %s953_s9, 0 }
 0x20d   :  { %957 = shalt.err (%p1019_p2)  }
 0x20e   :  { %959 = vsyncmov [#allocation4 + $0x1] }
 0x211   :  { %s960_s10 = vpop.sfrf %959 }
 0x212   :  { %p1020_p3 = scmp.ne.s32.totalorder %s960_s10, 0 }
 0x214   :  { %964 = shalt.err (%p1020_p3)  }

</bundles_post_ra>
